<compile_context>
chip_gen: v7x
topology: tpu7x:2x2x1
jax: 0.10.0
libtpu: 0.0.40
codegen_flags: <defaults>
</compile_context>

<pallas_src>
import functools

import jax
import jax.numpy as jnp
from jax.experimental import pallas as pl
from jax.experimental.pallas import tpu as pltpu


def _round_up(x, m):
    return ((x + m - 1) // m) * m


def actor_kernel(x_ref, w1_ref, w2_ref, w3_ref, b_ref, out_ref):
    """One batch tile: 3 matmuls + relu/relu + tanh&sigmoid heads, single store."""
    fc1 = w1_ref.shape[1]
    fc2 = w2_ref.shape[1]
    act = w3_ref.shape[1]

    x = x_ref[...]

    b1 = b_ref[0:1, :fc1]   # (1, fc1) — static slices of the packed bias slab
    b2 = b_ref[1:2, :fc2]
    b3 = b_ref[2:3, :act]

    # fc1 + relu
    h1 = jnp.dot(x, w1_ref[...], preferred_element_type=jnp.float32) + b1
    h1 = jnp.maximum(h1, 0.0)

    # fc2 + relu
    h2 = jnp.dot(h1, w2_ref[...], preferred_element_type=jnp.float32) + b2
    h2 = jnp.maximum(h2, 0.0)

    # fc3 (shared for mu and sigma, exactly as the PyTorch forward)
    logits = jnp.dot(h2, w3_ref[...], preferred_element_type=jnp.float32) + b3

    # Single lane-contiguous output: [tanh(logits) | sigmoid(logits)]
    out_ref[...] = jnp.concatenate(
        [jnp.tanh(logits), jax.nn.sigmoid(logits)], axis=-1
    )


def actor_forward(state, params, *, tb=None):
    """state: (B, state_size) f32; params: dict with w1, w2, w3, b_packed.

    Returns (mu, sigma), each (B, action_size).
    """
    B, S = state.shape
    w1, w2, w3, b_packed = params["w1"], params["w2"], params["w3"], params["b_packed"]
    A = w3.shape[1]

    # Batch tile: large enough to amortize per-grid-step overhead, sublane-aligned.
    if tb is None:
        tb = 512 if B >= 512 else _round_up(B, 8)
    tb = max(8, _round_up(tb, 8))

    B_pad = _round_up(B, tb)
    if B_pad != B:
        state = jnp.pad(state, ((0, B_pad - B), (0, 0)))

    grid = (pl.cdiv(B_pad, tb),)

    out = pl.pallas_call(
        actor_kernel,
        out_shape=jax.ShapeDtypeStruct((B_pad, 2 * A), jnp.float32),
        grid=grid,
        in_specs=[
            # state: streamed / double-buffered along the batch grid
            pl.BlockSpec((tb, S), lambda i: (i, 0)),
            # weights & biases: constant block index -> VMEM-resident across steps
            pl.BlockSpec(w1.shape, lambda i: (0, 0)),
            pl.BlockSpec(w2.shape, lambda i: (0, 0)),
            pl.BlockSpec(w3.shape, lambda i: (0, 0)),
            pl.BlockSpec(b_packed.shape, lambda i: (0, 0)),
        ],
        out_specs=pl.BlockSpec((tb, 2 * A), lambda i: (i, 0)),
        compiler_params=pltpu.CompilerParams(
            dimension_semantics=("parallel",),
        ),
    )(state, w1, w2, w3, b_packed)

    mu = out[:B, :A]
    sigma = out[:B, A:2 * A]
    return mu, sigma


def init_actor_params(key, state_size, action_size, fc1_units=64, fc2_units=64):
    """Deterministic init mirroring PyTorch nn.Linear default:
    uniform(-1/sqrt(fan_in), 1/sqrt(fan_in)) for both weight and bias.
    Biases are additionally packed into one (3, lane-padded) slab for the kernel."""
    keys = jax.random.split(key, 6)

    def linear(kw, kb, fan_in, fan_out):
        bound = 1.0 / float(fan_in) ** 0.5
        w = jax.random.uniform(kw, (fan_in, fan_out), jnp.float32, -bound, bound)
        b = jax.random.uniform(kb, (fan_out,), jnp.float32, -bound, bound)
        return w, b

    w1, b1 = linear(keys[0], keys[1], state_size, fc1_units)
    w2, b2 = linear(keys[2], keys[3], fc1_units, fc2_units)
    w3, b3 = linear(keys[4], keys[5], fc2_units, action_size)

    padl = _round_up(max(fc1_units, fc2_units, action_size), 128)
    b_packed = jnp.zeros((3, padl), jnp.float32)
    b_packed = b_packed.at[0, :fc1_units].set(b1)
    b_packed = b_packed.at[1, :fc2_units].set(b2)
    b_packed = b_packed.at[2, :action_size].set(b3)

    return {
        "w1": w1, "w2": w2, "w3": w3, "b_packed": b_packed,
        # raw biases kept only for the pure-JAX reference check
        "b1": b1, "b2": b2, "b3": b3,
    }


def _reference(state, params):
    h1 = jnp.maximum(state @ params["w1"] + params["b1"][None, :], 0.0)
    h2 = jnp.maximum(h1 @ params["w2"] + params["b2"][None, :], 0.0)
    logits = h2 @ params["w3"] + params["b3"][None, :]
    return jnp.tanh(logits), jax.nn.sigmoid(logits)


if __name__ == "__main__":
    key = jax.random.PRNGKey(0)
    k_params, k_state, k_state2 = jax.random.split(key, 3)

    batch = 8
    state_size = 16
    action_size = 8
    fc1_units = 64
    fc2_units = 64

    params = init_actor_params(k_params, state_size, action_size,
                               fc1_units=fc1_units, fc2_units=fc2_units)

    fwd = jax.jit(actor_forward, static_argnames=("tb",))

    # --- small-batch case (single grid step) ---
    state = jax.random.normal(k_state, (batch, state_size), jnp.float32)
    mu, sigma = fwd(state, params)
    jax.block_until_ready((mu, sigma))

    mu_ref, sigma_ref = _reference(state, params)
    assert mu.shape == (batch, action_size) and sigma.shape == (batch, action_size)
    assert jnp.allclose(mu, mu_ref, atol=1e-5), "mu mismatch (small batch)"
    assert jnp.allclose(sigma, sigma_ref, atol=1e-5), "sigma mismatch (small batch)"

    # --- ragged batch + multi-step grid (exercises padding + resident weights) ---
    batch2 = 70
    state2 = jax.random.normal(k_state2, (batch2, state_size), jnp.float32)
    mu2, sigma2 = fwd(state2, params, tb=32)   # grid = (3,), last tile padded
    jax.block_until_ready((mu2, sigma2))

    mu2_ref, sigma2_ref = _reference(state2, params)
    assert mu2.shape == (batch2, action_size) and sigma2.shape == (batch2, action_size)
    assert jnp.allclose(mu2, mu2_ref, atol=1e-5), "mu mismatch (ragged batch)"
    assert jnp.allclose(sigma2, sigma2_ref, atol=1e-5), "sigma mismatch (ragged batch)"

    print("KERNEL_OK")
</pallas_src>

<mosaic_0001>
module attributes {stable_mosaic.version = 11 : i64} {
  func.func @actor_kernel(%arg0: i32, %arg1: memref<8x16xf32, #tpu.memory_space<vmem>>, %arg2: memref<16x64xf32, #tpu.memory_space<vmem>>, %arg3: memref<64x64xf32, #tpu.memory_space<vmem>>, %arg4: memref<64x8xf32, #tpu.memory_space<vmem>>, %arg5: memref<3x128xf32, #tpu.memory_space<vmem>>, %arg6: memref<8x16xf32, #tpu.memory_space<vmem>>) attributes {dimension_semantics = [#tpu.dimension_semantics<parallel>], iteration_bounds = array<i64: 1>, scalar_prefetch = 0 : i64, scratch_operands = 0 : i64, tpu.core_type = #tpu.core_type<tc>, window_params = [{transform_indices = @transform_0, window_bounds = array<i64: 8, 16>}, {pipeline_mode = #tpu.pipeline_mode<synchronous>, transform_indices = @transform_1, window_bounds = array<i64: 16, 64>}, {pipeline_mode = #tpu.pipeline_mode<synchronous>, transform_indices = @transform_2, window_bounds = array<i64: 64, 64>}, {pipeline_mode = #tpu.pipeline_mode<synchronous>, transform_indices = @transform_3, window_bounds = array<i64: 64, 8>}, {pipeline_mode = #tpu.pipeline_mode<synchronous>, transform_indices = @transform_4, window_bounds = array<i64: 3, 128>}, {transform_indices = @transform_5, window_bounds = array<i64: 8, 16>}]} {
    %c0 = arith.constant 0 : index
    %c0_0 = arith.constant 0 : index
    %0 = vector.load %arg1[%c0, %c0_0] : memref<8x16xf32, #tpu.memory_space<vmem>>, vector<8x16xf32>
    %c0_1 = arith.constant 0 : index
    %c0_2 = arith.constant 0 : index
    %1 = vector.load %arg5[%c0_1, %c0_2] : memref<3x128xf32, #tpu.memory_space<vmem>>, vector<1x64xf32>
    %c1 = arith.constant 1 : index
    %c0_3 = arith.constant 0 : index
    %2 = vector.load %arg5[%c1, %c0_3] : memref<3x128xf32, #tpu.memory_space<vmem>>, vector<1x64xf32>
    %c2 = arith.constant 2 : index
    %c0_4 = arith.constant 0 : index
    %3 = vector.load %arg5[%c2, %c0_4] : memref<3x128xf32, #tpu.memory_space<vmem>>, vector<1x8xf32>
    %c0_5 = arith.constant 0 : index
    %c0_6 = arith.constant 0 : index
    %4 = vector.load %arg2[%c0_5, %c0_6] : memref<16x64xf32, #tpu.memory_space<vmem>>, vector<16x64xf32>
    %cst = arith.constant dense<0.000000e+00> : vector<8x64xf32>
    %5 = tpu.matmul %0, %4, %cst {dimension_numbers = #tpu.dot_dimension_numbers<[1], [0], [0], [1], [0, 0, 1, 1], [], []>} : vector<8x16xf32>, vector<16x64xf32>, vector<8x64xf32> -> vector<8x64xf32>
    %6 = vector.broadcast %1 : vector<1x64xf32> to vector<8x64xf32>
    %7 = arith.addf %5, %6 : vector<8x64xf32>
    %cst_7 = arith.constant 0.000000e+00 : f32
    %8 = vector.broadcast %cst_7 : f32 to vector<8x64xf32>
    %9 = arith.maximumf %7, %8 : vector<8x64xf32>
    %c0_8 = arith.constant 0 : index
    %c0_9 = arith.constant 0 : index
    %10 = vector.load %arg3[%c0_8, %c0_9] : memref<64x64xf32, #tpu.memory_space<vmem>>, vector<64x64xf32>
    %cst_10 = arith.constant dense<0.000000e+00> : vector<8x64xf32>
    %11 = tpu.matmul %9, %10, %cst_10 {dimension_numbers = #tpu.dot_dimension_numbers<[1], [0], [0], [1], [0, 0, 1, 1], [], []>} : vector<8x64xf32>, vector<64x64xf32>, vector<8x64xf32> -> vector<8x64xf32>
    %12 = vector.broadcast %2 : vector<1x64xf32> to vector<8x64xf32>
    %13 = arith.addf %11, %12 : vector<8x64xf32>
    %cst_11 = arith.constant 0.000000e+00 : f32
    %14 = vector.broadcast %cst_11 : f32 to vector<8x64xf32>
    %15 = arith.maximumf %13, %14 : vector<8x64xf32>
    %c0_12 = arith.constant 0 : index
    %c0_13 = arith.constant 0 : index
    %16 = vector.load %arg4[%c0_12, %c0_13] : memref<64x8xf32, #tpu.memory_space<vmem>>, vector<64x8xf32>
    %cst_14 = arith.constant dense<0.000000e+00> : vector<8x8xf32>
    %17 = tpu.matmul %15, %16, %cst_14 {dimension_numbers = #tpu.dot_dimension_numbers<[1], [0], [0], [1], [0, 0, 1, 1], [], []>} : vector<8x64xf32>, vector<64x8xf32>, vector<8x8xf32> -> vector<8x8xf32>
    %18 = vector.broadcast %3 : vector<1x8xf32> to vector<8x8xf32>
    %19 = arith.addf %17, %18 : vector<8x8xf32>
    %20 = math.tanh %19 : vector<8x8xf32>
    %21 = arith.negf %19 : vector<8x8xf32>
    %22 = math.exp %21 : vector<8x8xf32>
    %cst_15 = arith.constant 1.000000e+00 : f32
    %23 = vector.broadcast %cst_15 : f32 to vector<8x8xf32>
    %24 = arith.addf %23, %22 : vector<8x8xf32>
    %25 = arith.divf %23, %24 : vector<8x8xf32>
    %26 = tpu.concatenate %20, %25 in 1 : vector<8x8xf32>, vector<8x8xf32> -> vector<8x16xf32>
    %c0_16 = arith.constant 0 : index
    %c0_17 = arith.constant 0 : index
    %27 = vector.load %arg6[%c0_16, %c0_17] : memref<8x16xf32, #tpu.memory_space<vmem>>, vector<8x16xf32>
    tpu.vector_store %arg6[%c0_16, %c0_17], %26 {strides = array<i32>} : memref<8x16xf32, #tpu.memory_space<vmem>>, vector<8x16xf32>,
    return
  }
  func.func @transform_0(%arg0: i32) -> (i32, i32) {
    %c0_i32 = arith.constant 0 : i32
    %c0_i32_0 = arith.constant 0 : i32
    return %arg0, %c0_i32 : i32, i32
  }
  func.func @transform_1(%arg0: i32) -> (i32, i32) {
    %c0_i32 = arith.constant 0 : i32
    %c0_i32_0 = arith.constant 0 : i32
    %c0_i32_1 = arith.constant 0 : i32
    return %c0_i32, %c0_i32_0 : i32, i32
  }
  func.func @transform_2(%arg0: i32) -> (i32, i32) {
    %c0_i32 = arith.constant 0 : i32
    %c0_i32_0 = arith.constant 0 : i32
    %c0_i32_1 = arith.constant 0 : i32
    return %c0_i32, %c0_i32_0 : i32, i32
  }
  func.func @transform_3(%arg0: i32) -> (i32, i32) {
    %c0_i32 = arith.constant 0 : i32
    %c0_i32_0 = arith.constant 0 : i32
    %c0_i32_1 = arith.constant 0 : i32
    return %c0_i32, %c0_i32_0 : i32, i32
  }
  func.func @transform_4(%arg0: i32) -> (i32, i32) {
    %c0_i32 = arith.constant 0 : i32
    %c0_i32_0 = arith.constant 0 : i32
    %c0_i32_1 = arith.constant 0 : i32
    return %c0_i32, %c0_i32_0 : i32, i32
  }
  func.func @transform_5(%arg0: i32) -> (i32, i32) {
    %c0_i32 = arith.constant 0 : i32
    %c0_i32_0 = arith.constant 0 : i32
    return %arg0, %c0_i32 : i32, i32
  }
}

</mosaic_0001>

<bundles_post_ra>
// kernel: actor_forward.1
= control target key start
LH: loop header
LB: loop body
LE: loop exit
PB: predicated region body
PF: predicated region fallthrough
CT: control target
= control target key end

     0   :  { %10 = vsyncpa [#allocation3], 0  ;;  %s603_s0 = inlined_call_operand.hbm [shape: f32[8,16], index: 0, kind: input, shape index: {}]   ;;  %s604_s1 = inlined_call_operand.vmem [shape: f32[16,64], index: 1, kind: input, shape index: {}]   ;;  %s605_s2 = inlined_call_operand.vmem [shape: f32[64,64], index: 2, kind: input, shape index: {}]   ;;  %s606_s3 = inlined_call_operand.vmem [shape: f32[64,8], index: 3, kind: input, shape index: {}]   ;;  %s607_s4 = inlined_call_operand.hbm [shape: f32[3,128], index: 4, kind: input, shape index: {}]   ;;  %s608_s5 = inlined_call_operand.vmem [shape: f32[8,16], index: 5, kind: output, shape index: {}]  }
   0x1   :  { %11 = vsyncpa [#allocation5], 0  ;;  %s481_s18 = smov [#allocation2]   ;;  %s482_s20 = smov [#allocation4]  }
   0x2   :  { %s18_s19 = sshll.u32 %s481_s18, 4  ;;  %s34_s21 = sshll.u32 %s482_s20, 4  ;;  %s19_s19 = int_to_ptr.vmem [resolvable:$true] %s18_s19  ;;  %s35_s21 = int_to_ptr.vmem [resolvable:$true] %s34_s21 }
   0x3   :  { %s433_s24 = scalar_lea.hbm %s603_s0, 128 }
   0x4   :  { %p434_p0 = scmp.ne.s32.totalorder %s603_s0, %s433_s24  ;;  %p437_p1 = scmp.lt.u32.totalorder %s433_s24, %s603_s0 }
   0x6   :  { %p439_p2 = pnand %p437_p1, %p434_p0 }
   0x8   :  { %442 = shalt.err (!%p439_p2)
}
   0x9   :  { %s443_s29 = scalar_lea.vmem %s19_s19, 128  ;;  %p448_p4 = scmp.lt.s32.totalorder %s19_s19, %s19_s19 }
   0xa   :  { %p444_p3 = scmp.ne.s32.totalorder %s19_s19, %s443_s29  ;;  %p449_p5 = scmp.lt.s32.totalorder %s443_s29, %s443_s29 }
   0xc   :  { %p450_p6 = por %p449_p5, %p448_p4 }
   0xe   :  { %p451_p7 = pnand %p450_p6, %p444_p3 }
  0x10   :  { %454 = shalt.err (!%p451_p7)
}
  0x11   :  { %21 = dma.hbm_to_vmem [thread:$0]  %s603_s0, 128, %s19_s19, [#allocation3]  }
  0x12   :  { %s455_s9 = scalar_lea.hbm %s607_s4, 64 }
  0x13   :  { %p456_p8 = scmp.ne.s32.totalorder %s607_s4, %s455_s9  ;;  %p459_p9 = scmp.lt.u32.totalorder %s455_s9, %s607_s4 }
  0x15   :  { %p461_p10 = pnand %p459_p9, %p456_p8 }
  0x17   :  { %464 = shalt.err (!%p461_p10)
}
  0x18   :  { %s465_s14 = scalar_lea.vmem %s35_s21, 64  ;;  %p470_p12 = scmp.lt.s32.totalorder %s35_s21, %s35_s21 }
  0x19   :  { %p466_p11 = scmp.ne.s32.totalorder %s35_s21, %s465_s14  ;;  %p471_p13 = scmp.lt.s32.totalorder %s465_s14, %s465_s14 }
  0x1b   :  { %p472_p0 = por %p471_p13, %p470_p12 }
  0x1d   :  { %p473_p1 = pnand %p472_p0, %p466_p11 }
  0x1f   :  { %476 = shalt.err (!%p473_p1)
}
  0x20   :  { %37 = dma.hbm_to_vmem [thread:$0]  %s607_s4, 64, %s35_s21, [#allocation5]  }
  0x21   :  { %477 = dma.done.wait [#allocation3], 128  }
  0x22   :  { %478 = vsyncadd [#allocation3], 4294967168 }
  0x23   :  { %479 = dma.done.wait [#allocation5], 64  }
  0x24   :  { %480 = vsyncadd [#allocation5], 4294967232  ;;  %v483_v0 = vmov 0.0|0.0   ;;  %vm484_vm0 = vmmov 0   ;;  %v485_v1 = vmov 0.0   ;;  %v48_v2 = vld [vmem:[%s604_s1] sm:$0xff] }
  0x25   :  { %394 = vmatprep.subr.bf16.mxu0 %v483_v0  ;;  %353 = vmatprep.mubr.msk.f32.mxu0 %vm484_vm0, %v485_v1  ;;  %v49_v3 = vld [vmem:[%s604_s1 + $0x8] sm:$0xff]  ;;  %v129_v5 = vld [vmem:[%s605_s2] sm:$0xff]  ;;  %v131_v7 = vld [vmem:[%s605_s2 + $0x10] sm:$0xff]  ;;  %vm54_vm1 = vcmask 130048   ;;  %vm141_vm2 = vcmask 523264   ;;  %s486_s22 = smov 8  }
  0x26   :  { %397 = vmatprep.subr.bf16.mxu1 %v483_v0  ;;  %372 = vmatprep.mubr.msk.f32.mxu1 %vm484_vm0, %v485_v1  ;;  %v395_v4 = vpack.c.bf16 %v49_v3, %v48_v2  ;;  %v130_v6 = vld [vmem:[%s605_s2 + $0x8] sm:$0xff]  ;;  %v132_v9 = vld [vmem:[%s605_s2 + $0x18] sm:$0xff]  ;;  %v44_v10 = vld [vmem:[#allocation2] sm:$0xff]  ;;  %vm312_vm3 = vcmask 64512  }
  0x27   :  { %v398_v8 = vpack.c.bf16 %v130_v6, %v129_v5  ;;  %v401_v11 = vpack.c.bf16 %v132_v9, %v131_v7  ;;  %v133_v12 = vld [vmem:[%s605_s2 + $0x20] sm:$0xff]  ;;  %v134_v13 = vld [vmem:[%s605_s2 + $0x28] sm:$0xff]  ;;  %v135_v15 = vld [vmem:[%s605_s2 + $0x30] sm:$0xff] }
  0x28   :  { %396 = vmatpush3.bf16.msra.mxu0 %v395_v4  ;;  %v404_v14 = vpack.c.bf16 %v134_v13, %v133_v12  ;;  %v136_v16 = vld [vmem:[%s605_s2 + $0x38] sm:$0xff]  ;;  %v216_v18 = vld [vmem:[%s606_s3] sm:$0xff]  ;;  %v217_v19 = vld [vmem:[%s606_s3 + $0x8] sm:$0xff] }
  0x29   :  { %399 = vmatpush3.bf16.msra.mxu1 %v398_v8  ;;  %409 = vmatprep.subr.bf16.mxu0 %v483_v0  ;;  %v407_v17 = vpack.c.bf16 %v136_v16, %v135_v15  ;;  %v218_v20 = vld [vmem:[%s606_s3 + $0x10] sm:$0xff]  ;;  %v410_v21 = vpack.c.bf16 %v217_v19, %v216_v18  ;;  %v219_v22 = vld [vmem:[%s606_s3 + $0x18] sm:$0xff]  ;;  %v220_v24 = vld [vmem:[%s606_s3 + $0x20] sm:$0xff] }
  0x2a   :  { %400 = vmatprep.subr.bf16.mxu1 %v483_v0  ;;  %v413_v23 = vpack.c.bf16 %v219_v22, %v218_v20  ;;  %v221_v25 = vld [vmem:[%s606_s3 + $0x28] sm:$0xff]  ;;  %v222_v32 = vld [vmem:[%s606_s3 + $0x30] sm:$0xff]  ;;  %v223_v33 = vld [vmem:[%s606_s3 + $0x38] sm:$0xff] }
  0x2b   :  { %354 = vmatmul.mubr.msk.f32.vlgmr.msra.gmra.mrb[0].mxu0 %vm54_vm1, %v44_v10  ;;  %v416_v26 = vpack.c.bf16 %v221_v25, %v220_v24  ;;  %v321_v27 = vld [vmem:[#allocation4] ss:$0 sm:$0xff]  ;;  %v419_v34 = vpack.c.bf16 %v223_v33, %v222_v32  ;;  %v323_v35 = vld [vmem:[#allocation4 + $0x1] ss:$0 sm:$0xff]  ;;  %v325_v40 = vld [vmem:[#allocation4 + $0x2] ss:$0 sm:$0xff] }
  0x2c   :  { %391 = vmatprep.mubr.msk.f32.mxu0 %vm484_vm0, %v485_v1  ;;  %411 = vmatpush3.bf16.msra.mxu0 %v410_v21 }
  0x2d   :  { %402 = vmatpush3.bf16.msra.mxu1 %v401_v11  ;;  %412 = vmatprep.subr.bf16.mxu0 %v483_v0 }
  0x2e   :  { %403 = vmatprep.subr.bf16.mxu1 %v483_v0 }
  0x30   :  { %414 = vmatpush3.bf16.msra.mxu0 %v413_v23 }
  0x31   :  { %405 = vmatpush3.bf16.msra.mxu1 %v404_v14  ;;  %415 = vmatprep.subr.bf16.mxu0 %v483_v0 }
  0x32   :  { %406 = vmatprep.subr.bf16.mxu1 %v483_v0 }
  0x34   :  { %417 = vmatpush3.bf16.msra.mxu0 %v416_v26 }
  0x35   :  { %408 = vmatpush3.bf16.msra.mxu1 %v407_v17  ;;  %418 = vmatprep.subr.bf16.mxu0 %v483_v0 }
  0x38   :  { %420 = vmatpush3.bf16.msra.mxu0 %v419_v34 }
  0xfe   :  { %v124_v28 = vpop.f32.mrb[0].mxu0 }
  0xff   :  { %v125_v29 = vadd.f32 %v321_v27, %v124_v28  ;;  %v355_v30 = vpop.f32.mrb[1].mxu0 }
 0x101   :  { %v128_v31 = vmax.f32 %v125_v29, 0.0 }
 0x103   :  { %373 = vmatmul.mubr.msk.f32.vlgmr.msra.gmra.mrb[0].mxu1 %vm141_vm2, %v128_v31 }
 0x1d6   :  { %v211_v36 = vpop.f32.mrb[0].mxu1 }
 0x1d7   :  { %v212_v37 = vadd.f32 %v323_v35, %v211_v36  ;;  %v374_v38 = vpop.f32.mrb[1].mxu1 }
 0x1d9   :  { %v215_v39 = vmax.f32 %v212_v37, 0.0 }
 0x1db   :  { %392 = vmatmul.mubr.msk.f32.vlgmr.msra.gmra.mrb[2].mxu0 %vm141_vm2, %v215_v39 }
 0x2ae   :  { %v297_v41 = vpop.f32.mrb[2].mxu0 }
 0x2af   :  { %v298_v42 = vadd.f32 %v325_v40, %v297_v41  ;;  %v393_v43 = vpop.f32.mrb[3].mxu0 }
 0x2b1   :  { %v327_v44 = vmul.f32 -1.442695, %v298_v42 }
 0x2b3   :  { %427 = vpow2.f32 %v327_v44 }
 0x2bd   :  { %v428_v45 = vpop.eup %427 }
 0x2be   :  { %v305_v46 = vadd.f32 1.0, %v428_v45 }
 0x2c0   :  { %429 = vrcp.f32 %v305_v46 }
 0x2c1   :  { %431 = vtanh.f32 %v298_v42 }
 0x2ca   :  { %v430_v47 = vpop.eup %429 }
 0x2cb   :  { %309 = vrot.lane.b32.xlu0 %v430_v47, %s486_s22  ;;  %v432_v48 = vpop.eup %431 }
 0x33d   :  { %v310_v49 = vpop.permute.xlu0 %309 }
 0x33e   :  { %v313_v50 = vsel %vm312_vm3, %v432_v48, %v310_v49 }
 0x33f   :  { %314 = vst.msk [vmem:[%s608_s5] sm:$0xff] %vm54_vm1, %v313_v50 }
 0x340   :  { %319 = vsyncpa [#allocation3], 1 }
 0x341   :  { %320 = vsyncpa [#allocation5], 1 }

</bundles_post_ra>
